<compile_context>
chip_gen: v6e
topology: v6e:2x2x1
jax: 0.10.0
libtpu: 0.0.40
codegen_flags: <defaults>
</compile_context>

<pallas_src>
import functools
import math

import jax
import jax.numpy as jnp
import numpy as np
from jax.experimental import pallas as pl
from jax.experimental.pallas import tpu as pltpu


def _attn_kernel(q_ref, k_ref, v_ref, pval_ref, pattn_ref, *, scale):
    q = q_ref[0].astype(jnp.float32)          # (TQ, D)
    k = k_ref[0].astype(jnp.float32)          # (Lk, D)
    v = v_ref[0]                              # (Lk, Dv)
    # scores = Q @ K^T / sqrt(D): contract last dims directly (no explicit transpose).
    scores = jax.lax.dot_general(
        q, k, (((1,), (1,)), ((), ())),
        preferred_element_type=jnp.float32) * scale          # (TQ, Lk)
    m = jnp.max(scores, axis=-1, keepdims=True)
    e = jnp.exp(scores - m)
    p = e / jnp.sum(e, axis=-1, keepdims=True)               # exact softmax, f32
    # TODO(synk): nn.Dropout(p=0.1) is a no-op in eval mode; train-mode dropout
    # (pltpu.prng_seed / prng_random_bits) intentionally omitted.
    pattn_ref[0] = p.astype(pattn_ref.dtype)
    pval_ref[0] = jnp.dot(
        p.astype(v.dtype), v,
        preferred_element_type=jnp.float32).astype(pval_ref.dtype)


def _attn_kernel_masked(q_ref, k_ref, v_ref, m_ref, pval_ref, pattn_ref, *, scale):
    q = q_ref[0].astype(jnp.float32)
    k = k_ref[0].astype(jnp.float32)
    v = v_ref[0]
    scores = jax.lax.dot_general(
        q, k, (((1,), (1,)), ((), ())),
        preferred_element_type=jnp.float32) * scale
    # masked_fill_(m, -1e9) before softmax.
    scores = jnp.where(m_ref[0] != 0, jnp.float32(-1e9), scores)
    m = jnp.max(scores, axis=-1, keepdims=True)
    e = jnp.exp(scores - m)
    p = e / jnp.sum(e, axis=-1, keepdims=True)
    pattn_ref[0] = p.astype(pattn_ref.dtype)
    pval_ref[0] = jnp.dot(
        p.astype(v.dtype), v,
        preferred_element_type=jnp.float32).astype(pval_ref.dtype)


def attention(query, key, value, m=None):
    """query: (..., Lq, D), key: (..., Lk, D), value: (..., Lk, Dv),
    m: optional bool mask broadcastable to (..., Lq, Lk).
    Returns (p_val: (..., Lq, Dv), p_attn: (..., Lq, Lk))."""
    *lead, lq, d = query.shape
    lead = tuple(lead)
    lk = key.shape[-2]
    dv = value.shape[-1]
    bh = int(np.prod(lead)) if lead else 1

    q = query.reshape(bh, lq, d)
    k = key.reshape(bh, lk, d)
    v = value.reshape(bh, lk, dv)

    # Tile the query rows when Lq is large and 128-aligned; otherwise take it whole.
    tq = 128 if (lq > 128 and lq % 128 == 0) else lq
    grid = (bh, lq // tq)
    scale = 1.0 / math.sqrt(d)

    q_spec = pl.BlockSpec((1, tq, d), lambda i, j: (i, j, 0))
    k_spec = pl.BlockSpec((1, lk, d), lambda i, j: (i, 0, 0))
    v_spec = pl.BlockSpec((1, lk, dv), lambda i, j: (i, 0, 0))
    pval_spec = pl.BlockSpec((1, tq, dv), lambda i, j: (i, j, 0))
    pattn_spec = pl.BlockSpec((1, tq, lk), lambda i, j: (i, j, 0))

    out_shape = (
        jax.ShapeDtypeStruct((bh, lq, dv), query.dtype),
        jax.ShapeDtypeStruct((bh, lq, lk), query.dtype),
    )

    itemsize = jnp.dtype(query.dtype).itemsize
    cost = pl.CostEstimate(
        flops=2 * bh * lq * lk * d + 2 * bh * lq * lk * dv,
        transcendentals=bh * lq * lk,
        bytes_accessed=itemsize * (q.size + k.size + v.size
                                   + bh * lq * dv + bh * lq * lk),
    )
    cparams = pltpu.CompilerParams(
        dimension_semantics=("parallel", "parallel"))

    if m is None:
        p_val, p_attn = pl.pallas_call(
            functools.partial(_attn_kernel, scale=scale),
            out_shape=out_shape,
            grid=grid,
            in_specs=[q_spec, k_spec, v_spec],
            out_specs=(pval_spec, pattn_spec),
            compiler_params=cparams,
            cost_estimate=cost,
        )(q, k, v)
    else:
        mask = jnp.broadcast_to(m, lead + (lq, lk)).reshape(bh, lq, lk)
        mask = mask.astype(jnp.int32)
        m_spec = pl.BlockSpec((1, tq, lk), lambda i, j: (i, j, 0))
        p_val, p_attn = pl.pallas_call(
            functools.partial(_attn_kernel_masked, scale=scale),
            out_shape=out_shape,
            grid=grid,
            in_specs=[q_spec, k_spec, v_spec, m_spec],
            out_specs=(pval_spec, pattn_spec),
            compiler_params=cparams,
            cost_estimate=cost,
        )(q, k, v, mask)

    return (p_val.reshape(lead + (lq, dv)),
            p_attn.reshape(lead + (lq, lk)))


def _attention_ref(q, k, v, m=None):
    scores = jnp.einsum("...qd,...kd->...qk", q, k) / math.sqrt(q.shape[-1])
    if m is not None:
        scores = jnp.where(m, -1e9, scores)
    p = jax.nn.softmax(scores, axis=-1)
    return jnp.einsum("...qk,...kd->...qd", p, v), p


if __name__ == "__main__":
    # Small shapes consistent with fuseformer multi-head attention:
    # batch=2, heads=4, seq=16, head_dim=32.
    B, H, L, D = 2, 4, 16, 32
    key = jax.random.PRNGKey(0)
    kq, kk, kv, km = jax.random.split(key, 4)
    q = jax.random.normal(kq, (B, H, L, D), dtype=jnp.float32)
    k = jax.random.normal(kk, (B, H, L, D), dtype=jnp.float32)
    v = jax.random.normal(kv, (B, H, L, D), dtype=jnp.float32)

    # Unmasked path (m=None).
    p_val, p_attn = attention(q, k, v)
    p_val, p_attn = jax.block_until_ready((p_val, p_attn))
    ref_val, ref_attn = _attention_ref(q, k, v)
    assert p_val.shape == (B, H, L, D) and p_attn.shape == (B, H, L, L)
    assert jnp.allclose(p_val, ref_val, atol=1e-5), "p_val mismatch"
    assert jnp.allclose(p_attn, ref_attn, atol=1e-5), "p_attn mismatch"

    # Masked path (mask broadcast over heads, mirroring masked_fill_).
    mask = jax.random.bernoulli(km, 0.25, (B, 1, L, L))
    p_val_m, p_attn_m = attention(q, k, v, m=mask)
    p_val_m, p_attn_m = jax.block_until_ready((p_val_m, p_attn_m))
    ref_val_m, ref_attn_m = _attention_ref(q, k, v, mask)
    assert jnp.allclose(p_val_m, ref_val_m, atol=1e-5), "masked p_val mismatch"
    assert jnp.allclose(p_attn_m, ref_attn_m, atol=1e-5), "masked p_attn mismatch"

    print("KERNEL_OK")
</pallas_src>

<mosaic_0001>
module attributes {stable_mosaic.version = 11 : i64} {
  func.func @_attn_kernel(%arg0: i32, %arg1: i32, %arg2: memref<1x16x32xf32, #tpu.memory_space<vmem>>, %arg3: memref<1x16x32xf32, #tpu.memory_space<vmem>>, %arg4: memref<1x16x32xf32, #tpu.memory_space<vmem>>, %arg5: memref<1x16x32xf32, #tpu.memory_space<vmem>>, %arg6: memref<1x16x16xf32, #tpu.memory_space<vmem>>) attributes {dimension_semantics = [#tpu.dimension_semantics<parallel>, #tpu.dimension_semantics<parallel>], iteration_bounds = array<i64: 8, 1>, scalar_prefetch = 0 : i64, scratch_operands = 0 : i64, tpu.core_type = #tpu.core_type<tc>, window_params = [{transform_indices = @transform_0, window_bounds = array<i64: 1, 16, 32>}, {transform_indices = @transform_1, window_bounds = array<i64: 1, 16, 32>}, {transform_indices = @transform_2, window_bounds = array<i64: 1, 16, 32>}, {transform_indices = @transform_3, window_bounds = array<i64: 1, 16, 32>}, {transform_indices = @transform_4, window_bounds = array<i64: 1, 16, 16>}]} {
    %c0 = arith.constant 0 : index
    %c0_0 = arith.constant 0 : index
    %c0_1 = arith.constant 0 : index
    %0 = vector.load %arg2[%c0, %c0_0, %c0_1] : memref<1x16x32xf32, #tpu.memory_space<vmem>>, vector<1x16x32xf32>
    %1 = vector.shape_cast %0 : vector<1x16x32xf32> to vector<16x32xf32>
    %c0_2 = arith.constant 0 : index
    %c0_3 = arith.constant 0 : index
    %c0_4 = arith.constant 0 : index
    %2 = vector.load %arg3[%c0_2, %c0_3, %c0_4] : memref<1x16x32xf32, #tpu.memory_space<vmem>>, vector<1x16x32xf32>
    %3 = vector.shape_cast %2 : vector<1x16x32xf32> to vector<16x32xf32>
    %c0_5 = arith.constant 0 : index
    %c0_6 = arith.constant 0 : index
    %c0_7 = arith.constant 0 : index
    %4 = vector.load %arg4[%c0_5, %c0_6, %c0_7] : memref<1x16x32xf32, #tpu.memory_space<vmem>>, vector<1x16x32xf32>
    %5 = vector.shape_cast %4 : vector<1x16x32xf32> to vector<16x32xf32>
    %cst = arith.constant dense<0.000000e+00> : vector<16x16xf32>
    %6 = tpu.matmul %1, %3, %cst {dimension_numbers = #tpu.dot_dimension_numbers<[1], [1], [0], [0], [0, 0, 1, 0], [], []>} : vector<16x32xf32>, vector<16x32xf32>, vector<16x16xf32> -> vector<16x16xf32>
    %cst_8 = arith.constant 0.176776692 : f32
    %7 = vector.broadcast %cst_8 : f32 to vector<16x16xf32>
    %8 = arith.mulf %6, %7 : vector<16x16xf32>
    %cst_9 = arith.constant dense<0xFF800000> : vector<16xf32>
    %9 = vector.multi_reduction <maximumf>, %8, %cst_9 [1] : vector<16x16xf32> to vector<16xf32>
    %10 = vector.shape_cast %9 : vector<16xf32> to vector<16x1xf32>
    %11 = vector.broadcast %10 : vector<16x1xf32> to vector<16x16xf32>
    %12 = arith.subf %8, %11 : vector<16x16xf32>
    %13 = math.exp %12 : vector<16x16xf32>
    %cst_10 = arith.constant dense<0.000000e+00> : vector<16xf32>
    %14 = vector.multi_reduction <add>, %13, %cst_10 [1] : vector<16x16xf32> to vector<16xf32>
    %15 = vector.shape_cast %14 : vector<16xf32> to vector<16x1xf32>
    %16 = vector.broadcast %15 : vector<16x1xf32> to vector<16x16xf32>
    %17 = arith.divf %13, %16 : vector<16x16xf32>
    %c0_11 = arith.constant 0 : index
    %c0_12 = arith.constant 0 : index
    %c0_13 = arith.constant 0 : index
    %18 = vector.load %arg6[%c0_11, %c0_12, %c0_13] : memref<1x16x16xf32, #tpu.memory_space<vmem>>, vector<1x16x16xf32>
    %19 = vector.shape_cast %18 : vector<1x16x16xf32> to vector<16x16xf32>
    %20 = vector.shape_cast %17 : vector<16x16xf32> to vector<1x16x16xf32>
    tpu.vector_store %arg6[%c0_11, %c0_12, %c0_13], %20 {strides = array<i32>} : memref<1x16x16xf32, #tpu.memory_space<vmem>>, vector<1x16x16xf32>,
    %cst_14 = arith.constant dense<0.000000e+00> : vector<16x32xf32>
    %21 = tpu.matmul %17, %5, %cst_14 {dimension_numbers = #tpu.dot_dimension_numbers<[1], [0], [0], [1], [0, 0, 1, 1], [], []>} : vector<16x16xf32>, vector<16x32xf32>, vector<16x32xf32> -> vector<16x32xf32>
    %c0_15 = arith.constant 0 : index
    %c0_16 = arith.constant 0 : index
    %c0_17 = arith.constant 0 : index
    %22 = vector.load %arg5[%c0_15, %c0_16, %c0_17] : memref<1x16x32xf32, #tpu.memory_space<vmem>>, vector<1x16x32xf32>
    %23 = vector.shape_cast %22 : vector<1x16x32xf32> to vector<16x32xf32>
    %24 = vector.shape_cast %21 : vector<16x32xf32> to vector<1x16x32xf32>
    tpu.vector_store %arg5[%c0_15, %c0_16, %c0_17], %24 {strides = array<i32>} : memref<1x16x32xf32, #tpu.memory_space<vmem>>, vector<1x16x32xf32>,
    return
  }
  func.func @transform_0(%arg0: i32, %arg1: i32) -> (i32, i32, i32) {
    %c0_i32 = arith.constant 0 : i32
    %c0_i32_0 = arith.constant 0 : i32
    return %arg0, %arg1, %c0_i32 : i32, i32, i32
  }
  func.func @transform_1(%arg0: i32, %arg1: i32) -> (i32, i32, i32) {
    %c0_i32 = arith.constant 0 : i32
    %c0_i32_0 = arith.constant 0 : i32
    %c0_i32_1 = arith.constant 0 : i32
    return %arg0, %c0_i32, %c0_i32_0 : i32, i32, i32
  }
  func.func @transform_2(%arg0: i32, %arg1: i32) -> (i32, i32, i32) {
    %c0_i32 = arith.constant 0 : i32
    %c0_i32_0 = arith.constant 0 : i32
    %c0_i32_1 = arith.constant 0 : i32
    return %arg0, %c0_i32, %c0_i32_0 : i32, i32, i32
  }
  func.func @transform_3(%arg0: i32, %arg1: i32) -> (i32, i32, i32) {
    %c0_i32 = arith.constant 0 : i32
    %c0_i32_0 = arith.constant 0 : i32
    return %arg0, %arg1, %c0_i32 : i32, i32, i32
  }
  func.func @transform_4(%arg0: i32, %arg1: i32) -> (i32, i32, i32) {
    %c0_i32 = arith.constant 0 : i32
    %c0_i32_0 = arith.constant 0 : i32
    return %arg0, %arg1, %c0_i32 : i32, i32, i32
  }
}

</mosaic_0001>

<bundles_post_ra>
// kernel: tpu_custom_call.1
= control target key start
LH: loop header
LB: loop body
LE: loop exit
PB: predicated region body
PF: predicated region fallthrough
CT: control target
= control target key end

     0   :  { %s1392_s0 = inlined_call_operand.hbm [shape: f32[8,16,32], index: 0, kind: input, shape index: {}]   ;;  %s1393_s1 = inlined_call_operand.hbm [shape: f32[8,16,32], index: 1, kind: input, shape index: {}]   ;;  %s1394_s2 = inlined_call_operand.hbm [shape: f32[8,16,32], index: 2, kind: input, shape index: {}]   ;;  %s1395_s3 = inlined_call_operand.hbm [shape: f32[8,16,32], index: 3, kind: output, shape index: {0}]   ;;  %s1396_s4 = inlined_call_operand.hbm [shape: f32[8,16,16], index: 4, kind: output, shape index: {1}]  }
   0x1   :  { %1403 = sst [smem:[#allocation19_spill]] %s1393_s1 }
   0x2   :  { %10 = vsyncpa [#allocation3], 0 }
   0x3   :  { %12 = vsyncpa [#allocation3 + $0x1], 0 }
   0x4   :  { %13 = vsyncpa [#allocation6], 0 }
   0x5   :  { %15 = vsyncpa [#allocation6 + $0x1], 0 }
   0x6   :  { %16 = vsyncpa [#allocation4], 0 }
   0x7   :  { %18 = vsyncpa [#allocation4 + $0x1], 0 }
   0x8   :  { %19 = vsyncpa [#allocation10], 0 }
   0x9   :  { %21 = vsyncpa [#allocation10 + $0x1], 0  ;;  %s1118_s15 = smov 0   ;;  %s1120_s16 = smov 0  }
   0xa   :  { %s1122_s17 = smov 0   ;;  %s1124_s18 = smov 0  }
   0xb   :  { %s1126_s19 = smov 0   ;;  %s1128_s20 = smov 0  }
   0xc LB: > { %1404 = sst [smem:[#allocation15_spill]] %s1078_s19  ;;  %s1149_s21 = sadd.s32 4294967295, %s1082_s20   ;;  %s1082_s20 = sphi %s1128_s20, %s27_s20   ;;  %s1078_s19 = sphi %s1126_s19, %s1420_s19   ;;  %s1074_s18 = sphi %s1124_s18, %s1419_s18   ;;  %s1070_s17 = sphi %s1122_s17, %s1423_s17   ;;  %s1066_s16 = sphi %s1120_s16, %s1422_s16   ;;  %s1062_s15 = sphi %s1118_s15, %s1421_s15  }
   0xd   : > { %s736_s22 = sadd.s32 4294967294, %s1082_s20   ;;  %s39_s23 = sadd.s32 1, %s1078_s19 }
   0xe   : > { %s48_s24 = sadd.s32 1, %s1070_s17  ;;  %p41_p0 = scmp.ge.s32.totalorder %s39_s23, 8 }
   0xf   : > { %p55_p1 = scmp.ne.s32.totalorder %s1070_s17, %s1066_s16  ;;  %p56_p2 = scmp.eq.s32.totalorder %s1082_s20, 0 }
  0x10   : > { %p61_p3 = scmp.ne.s32.totalorder %s1066_s16, %s1062_s15  ;;  %s1425_s23 = smov (%p41_p0, %s39_s23), 0 }
  0x11   : > { %1405 = sst [smem:[#allocation16_spill]] %s1425_s23  ;;  %p1161_p4 = por %p56_p2, %p55_p1 }
  0x12   : > { %p62_p5 = scmp.eq.s32.totalorder %s1149_s21, 0  ;;  %s43_s26 = ssub.s32 %s1078_s19, %s1425_s23 }
  0x13   : > { %p139_p6 = scmp.eq.s32.totalorder %s1149_s21, 7  ;;  %p46_p7 = scmp.eq.s32.totalorder %s43_s26, 0 }
  0x14   : > { %p1169_p8 = por %p62_p5, %p61_p3  ;;  %p145_p10 = scmp.eq.s32.totalorder %s736_s22, 7 }
  0x15   : > { %p1173_p9 = por %p139_p6, %p55_p1  ;;  %p822_p12 = scmp.lt.s32.totalorder %s1082_s20, 8 }
  0x16   : > { %s1178_s29 = scalar_select %p46_p7, %s1070_s17, %s48_s24  }
  0x17   : > { %p1180_p11 = por %p145_p10, %p61_p3  ;;  %s1397_s5 = sand.u32 1, %s1070_s17  }
  0x18   : > { %1409 = sst [smem:[#allocation17_spill]] %s1178_s29  ;;  %s1188_s6 = sshll.u32 %s1397_s5, 4 }
  0x19   : > { %s1410_s30 = scalar_select %p1180_p11, 1, 0 }
  0x1a   : > { %s1191_s7 = sshll.u32 %s1078_s19, 8  ;;  %p1195_p13 = pnand %p822_p12, %p1161_p4 }
  0x1b   : > { %1411 = sst [smem:[#allocation18_spill]] %s1410_s30  ;;  %s216_s9 = sand.u32 1, %s1082_s20  }
  0x1c   : > { %s1413_s1 = sld [smem:[#allocation19_spill]]  ;;  %s220_s13 = scalar_lea.vmem [#allocation5], %s1188_s6 }
  0x1d   : > { %s227_s14 = sshll.u32 %s220_s13, 4  ;;  %p748_p0 = scmp.ge.s32.totalorder %s1082_s20, 1  ;;  %s228_s14 = int_to_ptr.vmem [resolvable:$true] %s227_s14 }
  0x1e   : > { %p256_p1 = scmp.lt.s32.totalorder %s1082_s20, 9  ;;  %s1207_s22 = scalar_lea.sflag [#allocation6], %s216_s9 }
  0x1f   : > { %p886_p2 = pneg %p1195_p13  ;;  %s897_s24 = scalar_lea.vmem %s228_s14, 256 }
  0x20   : > { %p898_p3 = scmp.ne.s32.totalorder %s228_s14, %s897_s24  ;;  %s1084_s25 = smov [#allocation5]  }
  0x21   : > { %s902_s26 = sshll.u32 %s1084_s25, 4  ;;  %s903_s26 = int_to_ptr.vmem [resolvable:$false] %s902_s26 }
  0x22   : > { %s226_s12 = scalar_lea.hbm %s1413_s1, %s1191_s7  ;;  %p900_p4 = pnand %p898_p3, %p886_p2 }
  0x23   : > { %s904_s10 = scalar_lea.vmem %s903_s26, 512  ;;  %p905_p6 = scmp.lt.s32.totalorder %s228_s14, %s903_s26 }
  0x24   : > { %p901_p5 = pneg %p900_p4  ;;  %p906_p7 = scmp.lt.s32.totalorder %s904_s10, %s897_s24 }
  0x26   : > { %p907_p10 = por %p906_p7, %p905_p6 }
  0x28   : > { %p908_p12 = pnand %p907_p10, %p901_p5 }
  0x2a   : > { %911 = shalt.err (!%p908_p12)
}
  0x2b   : > { %s1401_s11 = smov 128   ;;  %s1086_s9 = smov 8  }
  0x2c   : > { %811 = dma.hbm_to_vmem [thread:$0]  (!%p1195_p13), %s226_s12, 256, %s228_s14, %s1207_s22, %s1401_s11, %s1401_s11, %s1086_s9  }
  0x2d   : > { %p1224_p3 = pnand %p748_p0, %p256_p1  ;;  %s205_s26 = scalar_lea.hbm %s1392_s0, %s1191_s7 }
  0x2e   : > { %s197_s10 = scalar_lea.vmem [#allocation2], %s1188_s6  ;;  %s247_s19 = scalar_lea.hbm %s1394_s2, %s1191_s7 }
  0x2f   : > { %s206_s5 = sshll.u32 %s197_s10, 4  ;;  %s1415_s29 = sand.u32 1, %s1070_s17   ;;  %s207_s5 = int_to_ptr.vmem [resolvable:$true] %s206_s5 }
  0x30   : > { %s194_s30 = scalar_lea.sflag [#allocation3], %s1415_s29  ;;  %s925_s12 = scalar_lea.vmem %s207_s5, 256 }
  0x31   : > { %p926_p4 = scmp.ne.s32.totalorder %s207_s5, %s925_s12  ;;  %s1087_s14 = smov [#allocation2]  }
  0x32   : > { %s930_s11 = sshll.u32 %s1087_s14, 4  ;;  %s931_s11 = int_to_ptr.vmem [resolvable:$false] %s930_s11 }
  0x33   : > { %p928_p0 = pnand %p926_p4, %p886_p2  ;;  %s932_s24 = scalar_lea.vmem %s931_s11, 512 }
  0x34   : > { %p933_p5 = scmp.lt.s32.totalorder %s207_s5, %s931_s11  ;;  %p934_p6 = scmp.lt.s32.totalorder %s932_s24, %s925_s12 }
  0x35   : > { %p929_p1 = pneg %p928_p0 }
  0x36   : > { %p935_p7 = por %p934_p6, %p933_p5 }
  0x38   : > { %p936_p10 = pnand %p935_p7, %p929_p1 }
  0x3a   : > { %939 = shalt.err (!%p936_p10)
}
  0x3b   : > { %s1416_s1 = smov 128   ;;  %s241_s23 = scalar_lea.vmem [#allocation7], %s1188_s6 }
  0x3c   : > { %808 = dma.hbm_to_vmem [thread:$0]  (!%p1195_p13), %s205_s26, 256, %s207_s5, %s194_s30, %s1416_s1, %s1416_s1, %s1086_s9  }
  0x3d   : > { %s248_s29 = sshll.u32 %s241_s23, 4  ;;  %s1088_s11 = smov [#allocation7]   ;;  %s249_s29 = int_to_ptr.vmem [resolvable:$true] %s248_s29 }
  0x3e   : > { %s953_s25 = scalar_lea.vmem %s249_s29, 256  ;;  %s958_s10 = sshll.u32 %s1088_s11, 4  ;;  %s959_s10 = int_to_ptr.vmem [resolvable:$false] %s958_s10 }
  0x3f   : > { %p954_p12 = scmp.ne.s32.totalorder %s249_s29, %s953_s25  ;;  %s960_s12 = scalar_lea.vmem %s959_s10, 512 }
  0x40   : > { %p961_p1 = scmp.lt.s32.totalorder %s249_s29, %s959_s10  ;;  %p962_p5 = scmp.lt.s32.totalorder %s960_s12, %s953_s25 }
  0x41   : > { %p956_p4 = pnand %p954_p12, %p886_p2 }
  0x42   : > { %p963_p6 = por %p962_p5, %p961_p1 }
  0x43   : > { %p957_p0 = pneg %p956_p4 }
  0x45   : > { %p964_p7 = pnand %p963_p6, %p957_p0 }
  0x47   : > { %967 = shalt.err (!%p964_p7)
}
  0x48   : > { %814 = dma.hbm_to_vmem [thread:$0]  (!%p1195_p13), %s247_s19, 256, %s249_s29, %s1207_s22, %s1416_s1, %s1416_s1, %s1086_s9  }
  0x49   : > { %260 = sbr.rel (%p1224_p3) target bundleno = 812 (0x32c), region = 32  ;;  %s1265_s6 = sand.u32 (!%p1224_p3), 1, %s1066_s16  }
  0x4a   : > { %s1268_s8 = sshll.u32 (!%p1224_p3), %s1265_s6, 4  ;;  %s263_s26 = scalar_lea.sflag (!%p1224_p3), [#allocation3], %s1265_s6 }
  0x4b   : > { %s266_s14 = scalar_lea.vmem (!%p1224_p3), [#allocation2], %s1268_s8 }
  0x4e   : > { %1045 = dma.done.wait (%p1169_p8), %s263_s26, 256  }
  0x4f   : > { %1047 = vsyncadd (%p1169_p8), %s263_s26, 4294967040  ;;  %s271_s19 = sand.u32 1, %s1149_s21   ;;  %s275_s22 = scalar_lea.vmem [#allocation5], %s1268_s8 }
  0x50   : > { %s272_s7 = scalar_lea.sflag [#allocation6], %s271_s19 }
  0x51   : > { %1049 = dma.done.wait (%p1169_p8), %s272_s7, 512  }
  0x52   : > { %1051 = vsyncadd (%p1169_p8), %s272_s7, 4294966784  ;;  %vm333_vm0 = vcmask 261120   ;;  %v330_v0 = vld [vmem:[%s275_s22 + $0x8] sm:$0xff]  ;;  %v329_v1 = vld [vmem:[%s275_s22] sm:$0xff]  ;;  %vm423_vm1 = vcmask 130048   ;;  %s284_s21 = scalar_lea.vmem [#allocation7], %s1268_s8 }
  0x53   : > { %v327_v2 = vld [vmem:[%s266_s14] sm:$0xff]  ;;  %781 = vmatprep.subr.msk.mxu0 %vm333_vm0, %v330_v0  ;;  %v328_v3 = vld [vmem:[%s266_s14 + $0x8] sm:$0xff]  ;;  %s323_s27 = scalar_lea.vmem [#allocation9], %s1268_s8  ;;  %s771_s9 = sshll.u32 %s1074_s18, 8 }
  0x54   : > { %785 = vmatprep.mubr.msk.f32.mxu0 %vm333_vm0, %v327_v2  ;;  %782 = vmatpush3.xpose.msk.msra.mxu0 %vm333_vm0, %v330_v0  ;;  %v332_v20 = vld [vmem:[%s284_s21 + $0x8] sm:$0xff]  ;;  %v331_v21 = vld [vmem:[%s284_s21] sm:$0xff]  ;;  %s1304_s1 = scalar_lea.hbm %s1396_s4, %s771_s9  ;;  %s570_s23 = sshll.u32 %s323_s27, 4  ;;  %s1306_s23 = int_to_ptr.vmem [resolvable:$true] %s570_s23 }
  0x55   : > { %783 = vmatprep.subr.msk.mxu0 %vm333_vm0, %v329_v1  ;;  %788 = vmatprep.subr.mxu1 %v332_v20  ;;  %s537_s29 = scalar_lea.sflag [#allocation10], %s1265_s6  ;;  %s968_s25 = scalar_lea.vmem %s1306_s23, 256 }
  0x56   : > { %789 = vmatpush3.msra.mxu1 %v332_v20  ;;  %p969_p8 = scmp.ne.s32.totalorder %s1306_s23, %s968_s25  ;;  %s1089_s11 = smov [#allocation9]  }
  0x57   : > { %790 = vmatprep.subr.mxu1 %v331_v21  ;;  %s972_s10 = sshll.u32 %s1089_s11, 4  ;;  %s973_s10 = int_to_ptr.vmem [resolvable:$false] %s972_s10 }
  0x58   : > { %784 = vmatpush3.xpose.msk.msra.mxu0 %vm333_vm0, %v329_v1  ;;  %791 = vmatpush3.msra.mxu1 %v331_v21  ;;  %p970_p13 = pnand %p969_p8, %p1173_p9  ;;  %s974_s12 = scalar_lea.vmem %s973_s10, 512 }
  0x59   : > { %p975_p3 = scmp.lt.s32.totalorder %s1306_s23, %s973_s10  ;;  %p976_p10 = scmp.lt.s32.totalorder %s974_s12, %s968_s25 }
  0x5a   : > { %p971_p2 = pneg %p970_p13 }
  0x5b   : > { %786 = vmatmul.mubr.msk.f32.vlgmr.msra.gmra.mxu0 %vm333_vm0, %v328_v3  ;;  %p977_p12 = por %p976_p10, %p975_p3 }
  0x5d   : > { %p978_p4 = pnand %p977_p12, %p971_p2 }
 0x11b   : > { %v787_v4 = vpop.f32.mrf.mxu0 }
 0x11c   : > { %v422_v7 = vmul.f32 0.17677669, %v787_v4 }
 0x11d   : > { %v412_v5 = vpop.f32.mrf.mxu0 }
 0x11e   : > { %v421_v6 = vmul.f32 0.17677669, %v412_v5  ;;  %v427_v9 = vsel %vm423_vm1, %v422_v7, -inf }
 0x120   : > { %v424_v8 = vsel %vm423_vm1, %v421_v6, -inf }
 0x121   : > { %425 = vmax.xlane.f32.xlu0 %v424_v8 }
 0x125   : > { %428 = vmax.xlane.f32.xlu0 %v427_v9 }
 0x1aa   : > { %v426_v10 = vpop.xlane.xlu0 %425 }
 0x1ab   : > { %v430_v11 = vsub.f32 %v421_v6, %v426_v10 }
 0x1ad   : > { %v432_v12 = vmul.f32 1.442695, %v430_v11 }
 0x1ae   : > { %v429_v13 = vpop.xlane.xlu0 %428 }
 0x1af   : > { %876 = vpow2.f32 %v432_v12  ;;  %v431_v14 = vsub.f32 %v422_v7, %v429_v13 }
 0x1b1   : > { %v434_v15 = vmul.f32 1.442695, %v431_v14 }
 0x1b3   : > { %878 = vpow2.f32 %v434_v15 }
 0x1bc   : > { %v877_v16 = vpop.eup %876 }
 0x1bd   : > { %v436_v17 = vsel %vm423_vm1, %v877_v16, 0.0 }
 0x1be   : > { %437 = vadd.xlane.f32.xlu1 %v436_v17 }
 0x1c0   : > { %v879_v18 = vpop.eup %878 }
 0x1c1   : > { %v439_v19 = vsel %vm423_vm1, %v879_v18, 0.0 }
 0x1c2   : > { %440 = vadd.xlane.f32.xlu1 %v439_v19 }
 0x247   : > { %v438_v22 = vpop.xlane.xlu1 %437 }
 0x248   : > { %880 = vrcp.f32 %v438_v22 }
 0x24b   : > { %v441_v23 = vpop.xlane.xlu1 %440 }
 0x24c   : > { %882 = vrcp.f32 %v441_v23 }
 0x255   : > { %v881_v24 = vpop.eup %880 }
 0x256   : > { %v443_v25 = vmul.f32 %v881_v24, %v877_v16 }
 0x258   : > { %446 = vst.msk [vmem:[%s323_s27] sm:$0xff] %vm423_vm1, %v443_v25  ;;  %792 = vmatprep.mubr.msk.f32.mxu1 %vm423_vm1, %v443_v25 }
 0x259   : > { %v883_v26 = vpop.eup %882 }
 0x25a   : > { %v445_v27 = vmul.f32 %v883_v26, %v879_v18 }
 0x25c   : > { %793 = vmatmul.mubr.msk.f32.vlgmr.msra.gmra.mxu1 %vm423_vm1, %v445_v27  ;;  %447 = vst.msk [vmem:[%s323_s27 + $0x8] sm:$0xff] %vm423_vm1, %v445_v27 }
 0x25d   : > { %981 = shalt.err (!%p978_p4)
}
 0x25e   : > { %s982_s30 = scalar_lea.hbm %s1304_s1, 256  ;;  %s986_s14 = scalar_lea.hbm %s1396_s4, 2048 }
 0x25f   : > { %p983_p0 = scmp.ne.s32.totalorder %s1304_s1, %s982_s30  ;;  %p987_p6 = scmp.lt.s32.totalorder %s1304_s1, %s1396_s4 }
 0x260   : > { %p988_p7 = scmp.lt.s32.totalorder %s986_s14, %s982_s30 }
 0x261   : > { %p984_p1 = pnand %p983_p0, %p1173_p9 }
 0x262   : > { %p989_p8 = por %p988_p7, %p987_p6 }
 0x263   : > { %p985_p5 = pneg %p984_p1 }
 0x265   : > { %p990_p13 = pnand %p989_p8, %p985_p5 }
 0x267   : > { %993 = shalt.err (!%p990_p13)
}
 0x268   : > { %s1090_s22 = smov 128   ;;  %s1091_s21 = smov 8  }
 0x269   : > { %802 = dma.vmem_to_hbm [thread:$0]  (%p1173_p9), %s1306_s23, 256, %s1304_s1, %s537_s29, %s1090_s22, %s1090_s22, %s1091_s21  }
 0x26a   : > { %s316_s27 = scalar_lea.vmem [#allocation8], %s1268_s8  ;;  %s1343_s11 = scalar_lea.hbm %s1395_s3, %s771_s9 }
 0x26b   : > { %s552_s13 = sshll.u32 %s316_s27, 4  ;;  %s532_s1 = scalar_lea.sflag [#allocation4], %s1265_s6  ;;  %s1335_s13 = int_to_ptr.vmem [resolvable:$true] %s552_s13 }
 0x26c   : > { %s994_s8 = scalar_lea.vmem %s1335_s13, 256  ;;  %s1092_s23 = smov [#allocation8]  }
 0x26d   : > { %p995_p2 = scmp.ne.s32.totalorder %s1335_s13, %s994_s8  ;;  %s998_s29 = sshll.u32 %s1092_s23, 4  ;;  %s999_s29 = int_to_ptr.vmem [resolvable:$false] %s998_s29 }
 0x26e   : > { %s1000_s10 = scalar_lea.vmem %s999_s29, 512  ;;  %p1001_p12 = scmp.lt.s32.totalorder %s1335_s13, %s999_s29 }
 0x26f   : > { %p996_p3 = pnand %p995_p2, %p1173_p9  ;;  %p1002_p4 = scmp.lt.s32.totalorder %s1000_s10, %s994_s8 }
 0x271   : > { %p997_p10 = pneg %p996_p3  ;;  %p1003_p0 = por %p1002_p4, %p1001_p12 }
 0x273   : > { %p1004_p1 = pnand %p1003_p0, %p997_p10 }
 0x31c   : > { %v794_v28 = vpop.f32.mrf.mxu1 }
 0x31d   : > { %530 = vst.msk [vmem:[%s316_s27 + $0x8] sm:$0xff] %vm333_vm0, %v794_v28 }
 0x31e   : > { %v520_v29 = vpop.f32.mrf.mxu1 }
 0x31f   : > { %529 = vst.msk [vmem:[%s316_s27] sm:$0xff] %vm333_vm0, %v520_v29 }
 0x320   : > { %1007 = shalt.err (!%p1004_p1)
}
 0x321   : > { %s1008_s18 = scalar_lea.hbm %s1343_s11, 256  ;;  %s1012_s12 = scalar_lea.hbm %s1395_s3, 2048 }
 0x322   : > { %p1009_p5 = scmp.ne.s32.totalorder %s1343_s11, %s1008_s18  ;;  %p1013_p8 = scmp.lt.s32.totalorder %s1343_s11, %s1395_s3 }
 0x323   : > { %p1014_p13 = scmp.lt.s32.totalorder %s1012_s12, %s1008_s18 }
 0x324   : > { %p1010_p6 = pnand %p1009_p5, %p1173_p9 }
 0x325   : > { %p1015_p2 = por %p1014_p13, %p1013_p8 }
 0x326   : > { %p1011_p7 = pneg %p1010_p6 }
 0x328   : > { %p1016_p3 = pnand %p1015_p2, %p1011_p7 }
 0x32a   : > { %1019 = shalt.err (!%p1016_p3)
}
 0x32b   : > { %801 = dma.vmem_to_hbm [thread:$0]  (%p1173_p9), %s1335_s13, 256, %s1343_s11, %s532_s1, %s1090_s22, %s1090_s22, %s1091_s21  }
 0x32c PF: > { %p823_p10 = scmp.ge.s32.totalorder %s1082_s20, 2  ;;  %s585_s14 = sand.u32 1, %s1062_s15  }
 0x32d   : > { %s586_s19 = scalar_lea.sflag [#allocation4], %s585_s14 }
 0x32e   : > { %p816_p12 = pnand %p823_p10, %p1180_p11 }
 0x330   : > { %p817_p4 = pneg %p816_p12 }
 0x332   : > { %1053 = dma.done.wait (%p817_p4), %s586_s19, 256  }
 0x333   : > { %1055 = vsyncadd (%p817_p4), %s586_s19, 4294967040  ;;  %s595_s7 = scalar_lea.sflag [#allocation10], %s585_s14 }
 0x334   : > { %1057 = dma.done.wait (%p817_p4), %s595_s7, 256  }
 0x335   : > { %1059 = vsyncadd (%p817_p4), %s595_s7, 4294967040  ;;  %s27_s20 = sadd.s32 1, %s1082_s20   ;;  %s1418_s28 = sld [smem:[#allocation17_spill]] }
 0x336   : > { %p24_p0 = scmp.ge.s32.totalorder %s27_s20, 10   ;;  %s1419_s18 = sld [smem:[#allocation15_spill]] }
 0x337   : > { %s1420_s19 = sld [smem:[#allocation16_spill]]  ;;  %s1421_s15 = smov %s1066_s16 }
 0x338   : > { %s1422_s16 = smov %s1070_s17  ;;  %26 = sbr.rel (!%p24_p0) target bundleno = 12 (0xc), region = 118 }
 0x33b   : > { %s1423_s17 = smov %s1418_s28 }
 0x33d   :  { %600 = vsyncpa [#allocation3], 1 }
 0x33e   :  { %602 = vsyncpa [#allocation3 + $0x1], 1 }
 0x33f   :  { %603 = vsyncpa [#allocation6], 1 }
 0x340   :  { %605 = vsyncpa [#allocation6 + $0x1], 1 }
 0x341   :  { %606 = vsyncpa [#allocation4], 1 }
 0x342   :  { %608 = vsyncpa [#allocation4 + $0x1], 1 }
 0x343   :  { %609 = vsyncpa [#allocation10], 1 }
 0x344   :  { %611 = vsyncpa [#allocation10 + $0x1], 1 }

</bundles_post_ra>
